<compile_context>
chip_gen: v7x
topology: tpu7x:2x2x1
jax: 0.10.0
libtpu: 0.0.40
codegen_flags: <defaults>
</compile_context>

<pallas_src>
import functools
import numpy as np
import jax
import jax.numpy as jnp
from jax import lax
from jax.experimental import pallas as pl
from jax.experimental.pallas import tpu as pltpu

try:  # use scipy's Hungarian if available (orders of magnitude faster)
    from scipy.optimize import linear_sum_assignment as _scipy_lsa
except Exception:  # pragma: no cover
    _scipy_lsa = None


# ----------------------------- Pallas kernel --------------------------------
def _cost_kernel(logits_ref, points_ref, tgt_ids_ref, tgt_pts_ref, out_ref,
                 *, cost_class, cost_point, num_classes):
    # softmax over the class dimension (C is tiny; recompute per target tile)
    logits = logits_ref[...].astype(jnp.float32)                  # (tm, C)
    m = jnp.max(logits, axis=-1, keepdims=True)
    e = jnp.exp(logits - m)
    probs = e * pl.reciprocal(jnp.sum(e, axis=-1, keepdims=True), approx=True)

    ids = tgt_ids_ref[...]                                        # (1, tt) i32

    if num_classes <= 16:
        # class-prob gather as a select chain: compare on the narrow (1, tt)
        # ids, one vsel per class on the VPU (no bool->f32 convert / mul / add
        # per class, which was the binding VALU work before).
        gathered = probs[:, 0:1]                                  # (tm, 1)
        for c in range(1, num_classes):
            gathered = jnp.where(ids == c, probs[:, c:c + 1], gathered)
    else:
        # large-C fallback: one-hot gather on the (otherwise idle) MXU
        tt = ids.shape[-1]
        class_iota = lax.broadcasted_iota(jnp.int32, (num_classes, tt), 0)
        onehot = (class_iota == ids).astype(jnp.float32)          # (C, tt)
        gathered = jnp.dot(probs, onehot,
                           preferred_element_type=jnp.float32)    # (tm, tt)

    # cost_point[q, t] = || pred_points[q] - tgt_points[t] ||_2   (p=2 cdist)
    pts = points_ref[...].astype(jnp.float32)                     # (tm, 2)
    px = pts[:, 0:1]
    py = pts[:, 1:2]
    tx = tgt_pts_ref[0:1, :].astype(jnp.float32)                  # (1, tt)
    ty = tgt_pts_ref[1:2, :].astype(jnp.float32)
    dx = px - tx
    dy = py - ty
    dist = jnp.sqrt(dx * dx + dy * dy)                            # (tm, tt)

    # negation + weights folded into one expression
    out_ref[...] = cost_point * dist - cost_class * gathered


# ----------------------------- tiling helpers --------------------------------
def _round_up(x, m):
    return ((x + m - 1) // m) * m


def _cdiv(a, b):
    return -(-a // b)


def _pick_tile(n, unit, cap):
    """Balanced tile: multiple of `unit`, <= cap, minimizing padding of n."""
    n = max(int(n), 1)
    n_units = _cdiv(n, unit)
    max_units = max(cap // unit, 1)
    n_tiles = _cdiv(n_units, max_units)
    return _cdiv(n_units, n_tiles) * unit


def _target_padding(tmax, cap=1024):
    """Lane tile and padded target width (Tpad is a multiple of the tile)."""
    u = _cdiv(max(int(tmax), 1), 128)
    n_tiles = _cdiv(u, max(cap // 128, 1))
    tile_u = _cdiv(u, n_tiles)
    tt = tile_u * 128
    return tt, n_tiles * tt


# ------------------------------ kernel wrapper --------------------------------
def compute_cost_matrix(pred_logits, pred_points, tgt_ids_pad, tgt_pts_pad,
                        cost_class=1.0, cost_point=1.0,
                        max_tile_rows=1024, max_tile_targets=1024):
    """Per-batch (diagonal-block) cost matrices.

    pred_logits : (bs, nq, C)          pred_points : (bs, nq, 2)
    tgt_ids_pad : (bs, 1, Tpad) int32  tgt_pts_pad : (bs, 2, Tpad)
    Returns (bs, nq_pad, Tpad) float32.  Rows >= nq and columns >= the true
    per-batch target count hold finite padding garbage; the caller slices them
    off on the host before linear_sum_assignment.
    """
    bs, nq, num_classes = pred_logits.shape
    Tpad = int(tgt_ids_pad.shape[-1])
    assert Tpad % 128 == 0, "targets must be padded to a multiple of 128"

    tm = _pick_tile(nq, 8, max_tile_rows)
    nq_pad = _round_up(nq, tm)

    tt = min(max_tile_targets, Tpad)
    while Tpad % tt:          # Tpad is a multiple of 128, so this terminates
        tt -= 128

    if nq_pad != nq:
        pad = ((0, 0), (0, nq_pad - nq), (0, 0))
        pred_logits = jnp.pad(pred_logits, pad)
        pred_points = jnp.pad(pred_points, pad)

    kernel = functools.partial(_cost_kernel,
                               cost_class=float(cost_class),
                               cost_point=float(cost_point),
                               num_classes=int(num_classes))

    return pl.pallas_call(
        kernel,
        out_shape=jax.ShapeDtypeStruct((bs, nq_pad, Tpad), jnp.float32),
        grid=(bs, nq_pad // tm, Tpad // tt),
        in_specs=[
            pl.BlockSpec((None, tm, num_classes), lambda b, i, j: (b, i, 0)),
            pl.BlockSpec((None, tm, 2), lambda b, i, j: (b, i, 0)),
            pl.BlockSpec((None, 1, tt), lambda b, i, j: (b, 0, j)),
            pl.BlockSpec((None, 2, tt), lambda b, i, j: (b, 0, j)),
        ],
        out_specs=pl.BlockSpec((None, tm, tt), lambda b, i, j: (b, i, j)),
        compiler_params=pltpu.CompilerParams(
            dimension_semantics=("parallel", "parallel", "arbitrary"),
            vmem_limit_bytes=32 * 1024 * 1024),
    )(pred_logits, pred_points, tgt_ids_pad, tgt_pts_pad)


# -------------------- host-side Hungarian assignment ------------------------
def _hungarian_square(cost):
    """Classic O(n^3) Hungarian (Jonker-Volgenant style) for a square matrix."""
    n = cost.shape[0]
    INF = float("inf")
    u = [0.0] * (n + 1)
    v = [0.0] * (n + 1)
    p = [0] * (n + 1)
    way = [0] * (n + 1)
    for i in range(1, n + 1):
        p[0] = i
        j0 = 0
        minv = [INF] * (n + 1)
        used = [False] * (n + 1)
        while True:
            used[j0] = True
            i0 = p[j0]
            delta = INF
            j1 = 0
            for j in range(1, n + 1):
                if not used[j]:
                    cur = cost[i0 - 1, j - 1] - u[i0] - v[j]
                    if cur < minv[j]:
                        minv[j] = cur
                        way[j] = j0
                    if minv[j] < delta:
                        delta = minv[j]
                        j1 = j
            for j in range(n + 1):
                if used[j]:
                    u[p[j]] += delta
                    v[j] -= delta
                else:
                    minv[j] -= delta
            j0 = j1
            if p[j0] == 0:
                break
        while True:
            j1 = way[j0]
            p[j0] = p[j1]
            j0 = j1
            if j0 == 0:
                break
    row_to_col = [-1] * n
    for j in range(1, n + 1):
        if p[j] > 0:
            row_to_col[p[j] - 1] = j - 1
    return row_to_col


def _linear_sum_assignment(cost):
    """Rectangular min-cost assignment (scipy if available, else pure Python)."""
    cost = np.asarray(cost, dtype=np.float64)
    if _scipy_lsa is not None:
        r, c = _scipy_lsa(cost)
        return np.asarray(r, dtype=np.int64), np.asarray(c, dtype=np.int64)
    n, m = cost.shape
    if n == 0 or m == 0:
        return np.zeros(0, dtype=np.int64), np.zeros(0, dtype=np.int64)
    k = max(n, m)
    padded = np.zeros((k, k), dtype=np.float64)
    padded[:n, :m] = cost
    row_to_col = _hungarian_square(padded)
    rows, cols = [], []
    for i in range(n):
        j = row_to_col[i]
        if j < m:
            rows.append(i)
            cols.append(j)
    return np.asarray(rows, dtype=np.int64), np.asarray(cols, dtype=np.int64)


# --------------------------- module equivalent -------------------------------
class HungarianMatcherCrowd:
    def __init__(self, cost_class: float = 1.0, cost_point: float = 1.0):
        assert cost_class != 0 or cost_point != 0, "all costs cant be 0"
        self.cost_class = cost_class
        self.cost_point = cost_point

    def __call__(self, outputs, targets):
        pred_logits = outputs["pred_logits"]
        pred_points = outputs["pred_points"]
        bs, num_queries = pred_logits.shape[:2]

        sizes = [int(t["points"].shape[0]) for t in targets]
        if sum(sizes) == 0:
            return [(np.zeros(0, np.int64), np.zeros(0, np.int64)) for _ in targets]

        # per-batch targets, padded on the host to a common lane-aligned width
        # (tiny arrays -> no per-crowd-size XLA pad programs)
        Tmax = max(sizes)
        _, Tpad = _target_padding(Tmax)
        ids_np = np.zeros((bs, 1, Tpad), np.int32)
        pts_np = np.zeros((bs, 2, Tpad), np.float32)
        for b, t in enumerate(targets):
            sz = sizes[b]
            if sz:
                ids_np[b, 0, :sz] = np.asarray(t["labels"]).astype(np.int32)
                pts_np[b, :, :sz] = np.asarray(t["points"], np.float32).T

        # hot path: Pallas kernel computes only the per-batch diagonal blocks
        C = compute_cost_matrix(pred_logits, pred_points,
                                jnp.asarray(ids_np), jnp.asarray(pts_np),
                                self.cost_class, self.cost_point)

        # single D2H transfer; all per-batch slicing happens in numpy on host.
        C_np = np.asarray(jax.device_get(jax.block_until_ready(C)))

        # TODO(synk): linear_sum_assignment (Hungarian) is a sequential
        # combinatorial algorithm with no clean Pallas equivalent; it runs on
        # the host, mirroring the `.cpu()` in the reference implementation.
        results = []
        for b, sz in enumerate(sizes):
            if sz == 0:
                results.append((np.zeros(0, np.int64), np.zeros(0, np.int64)))
            else:
                results.append(
                    _linear_sum_assignment(C_np[b, :num_queries, :sz]))
        return results


# ------------------------------ reference ------------------------------------
def _reference_cost(pred_logits, pred_points, tgt_ids, tgt_points, wc, wp):
    bs, nq, _ = pred_logits.shape
    probs = jax.nn.softmax(pred_logits.reshape(bs * nq, -1), axis=-1)
    pts = pred_points.reshape(bs * nq, 2)
    cost_class = -probs[:, tgt_ids]
    diff = pts[:, None, :] - tgt_points[None, :, :]
    cost_point = jnp.sqrt(jnp.sum(diff * diff, axis=-1))
    return (wp * cost_point + wc * cost_class).reshape(bs, nq, -1)


if __name__ == "__main__":
    key = jax.random.PRNGKey(0)
    bs, num_queries, num_classes = 2, 8, 2
    k1, k2, k3 = jax.random.split(key, 3)

    pred_logits = jax.random.normal(k1, (bs, num_queries, num_classes),
                                    dtype=jnp.float32)
    pred_points = jax.random.uniform(k2, (bs, num_queries, 2),
                                     dtype=jnp.float32) * 16.0

    sizes = [3, 4]
    targets = []
    for b, sz in enumerate(sizes):
        kl, kp = jax.random.split(jax.random.fold_in(k3, b))
        targets.append({
            "labels": jax.random.randint(kl, (sz,), 0, num_classes,
                                         dtype=jnp.int32),
            "points": jax.random.uniform(kp, (sz, 2), dtype=jnp.float32) * 16.0,
        })

    matcher = HungarianMatcherCrowd(cost_class=1.0, cost_point=0.05)
    outputs = {"pred_logits": pred_logits, "pred_points": pred_points}

    # --- run the Pallas kernel once directly and block on the result --------
    Tmax = max(sizes)
    _, Tpad = _target_padding(Tmax)
    ids_np = np.zeros((bs, 1, Tpad), np.int32)
    pts_np = np.zeros((bs, 2, Tpad), np.float32)
    for b, t in enumerate(targets):
        sz = sizes[b]
        ids_np[b, 0, :sz] = np.asarray(t["labels"]).astype(np.int32)
        pts_np[b, :, :sz] = np.asarray(t["points"], np.float32).T

    C = compute_cost_matrix(pred_logits, pred_points,
                            jnp.asarray(ids_np), jnp.asarray(pts_np),
                            matcher.cost_class, matcher.cost_point)
    C = jax.block_until_ready(C)
    C_np = np.asarray(C)

    # --- sanity-check against a pure-JAX reference (per-batch diag blocks) --
    # tolerance loosened slightly: kernel uses the approximate EUP reciprocal
    tgt_ids_all = jnp.concatenate([t["labels"] for t in targets])
    tgt_points_all = jnp.concatenate([t["points"] for t in targets])
    C_ref = np.asarray(_reference_cost(pred_logits, pred_points,
                                       tgt_ids_all, tgt_points_all,
                                       matcher.cost_class, matcher.cost_point))
    offset = 0
    for b, sz in enumerate(sizes):
        np.testing.assert_allclose(C_np[b, :num_queries, :sz],
                                   C_ref[b, :, offset:offset + sz],
                                   rtol=5e-3, atol=5e-3)
        offset += sz

    # --- full forward (kernel + host-side Hungarian) ------------------------
    indices = matcher(outputs, targets)
    for (row, col), sz in zip(indices, sizes):
        assert len(row) == len(col) == min(num_queries, sz)

    print("KERNEL_OK")
</pallas_src>

<mosaic_0001>
module attributes {stable_mosaic.version = 11 : i64} {
  func.func @_cost_kernel(%arg0: i32, %arg1: i32, %arg2: i32, %arg3: memref<1x8x2xf32, #tpu.memory_space<vmem>>, %arg4: memref<1x8x2xf32, #tpu.memory_space<vmem>>, %arg5: memref<1x1x128xi32, #tpu.memory_space<vmem>>, %arg6: memref<1x2x128xf32, #tpu.memory_space<vmem>>, %arg7: memref<1x8x128xf32, #tpu.memory_space<vmem>>) attributes {dimension_semantics = [#tpu.dimension_semantics<parallel>, #tpu.dimension_semantics<parallel>, #tpu.dimension_semantics<arbitrary>], iteration_bounds = array<i64: 2, 1, 1>, scalar_prefetch = 0 : i64, scratch_operands = 0 : i64, tpu.core_type = #tpu.core_type<tc>, window_params = [{transform_indices = @transform_0, window_bounds = array<i64: 1, 8, 2>}, {transform_indices = @transform_1, window_bounds = array<i64: 1, 8, 2>}, {transform_indices = @transform_2, window_bounds = array<i64: 1, 1, 128>}, {transform_indices = @transform_3, window_bounds = array<i64: 1, 2, 128>}, {transform_indices = @transform_4, window_bounds = array<i64: 1, 8, 128>}]} {
    %c0 = arith.constant 0 : index
    %c0_0 = arith.constant 0 : index
    %c0_1 = arith.constant 0 : index
    %0 = vector.load %arg3[%c0, %c0_0, %c0_1] : memref<1x8x2xf32, #tpu.memory_space<vmem>>, vector<1x8x2xf32>
    %1 = vector.shape_cast %0 : vector<1x8x2xf32> to vector<8x2xf32>
    %cst = arith.constant dense<0xFF800000> : vector<8xf32>
    %2 = vector.multi_reduction <maximumf>, %1, %cst [1] : vector<8x2xf32> to vector<8xf32>
    %3 = vector.shape_cast %2 : vector<8xf32> to vector<8x1xf32>
    %4 = vector.broadcast %3 : vector<8x1xf32> to vector<8x2xf32>
    %5 = arith.subf %1, %4 : vector<8x2xf32>
    %6 = math.exp %5 : vector<8x2xf32>
    %cst_2 = arith.constant dense<0.000000e+00> : vector<8xf32>
    %7 = vector.multi_reduction <add>, %6, %cst_2 [1] : vector<8x2xf32> to vector<8xf32>
    %8 = vector.shape_cast %7 : vector<8xf32> to vector<8x1xf32>
    %9 = tpu.reciprocal %8 {approx = true} : vector<8x1xf32> -> vector<8x1xf32>
    %10 = vector.broadcast %9 : vector<8x1xf32> to vector<8x2xf32>
    %11 = arith.mulf %6, %10 : vector<8x2xf32>
    %c0_3 = arith.constant 0 : index
    %c0_4 = arith.constant 0 : index
    %c0_5 = arith.constant 0 : index
    %12 = vector.load %arg5[%c0_3, %c0_4, %c0_5] : memref<1x1x128xi32, #tpu.memory_space<vmem>>, vector<1x1x128xi32>
    %13 = vector.shape_cast %12 : vector<1x1x128xi32> to vector<1x128xi32>
    %14 = vector.extract_strided_slice %11 {offsets = [0, 0], sizes = [8, 1], strides = [1, 1]} : vector<8x2xf32> to vector<8x1xf32>
    %c1_i32 = arith.constant 1 : i32
    %15 = vector.broadcast %c1_i32 : i32 to vector<1x128xi32>
    %16 = arith.cmpi eq, %13, %15 : vector<1x128xi32>
    %17 = vector.extract_strided_slice %11 {offsets = [0, 1], sizes = [8, 1], strides = [1, 1]} : vector<8x2xf32> to vector<8x1xf32>
    %18 = vector.shape_cast %16 : vector<1x128xi1> to vector<1x128xi1>
    %19 = vector.broadcast %18 : vector<1x128xi1> to vector<8x128xi1>
    %20 = vector.shape_cast %17 : vector<8x1xf32> to vector<8x1xf32>
    %21 = vector.broadcast %20 : vector<8x1xf32> to vector<8x128xf32>
    %22 = vector.shape_cast %14 : vector<8x1xf32> to vector<8x1xf32>
    %23 = vector.broadcast %22 : vector<8x1xf32> to vector<8x128xf32>
    %24 = arith.select %19, %21, %23 : vector<8x128xi1>, vector<8x128xf32>
    %c0_6 = arith.constant 0 : index
    %c0_7 = arith.constant 0 : index
    %c0_8 = arith.constant 0 : index
    %25 = vector.load %arg4[%c0_6, %c0_7, %c0_8] : memref<1x8x2xf32, #tpu.memory_space<vmem>>, vector<1x8x2xf32>
    %26 = vector.shape_cast %25 : vector<1x8x2xf32> to vector<8x2xf32>
    %27 = vector.extract_strided_slice %26 {offsets = [0, 0], sizes = [8, 1], strides = [1, 1]} : vector<8x2xf32> to vector<8x1xf32>
    %28 = vector.extract_strided_slice %26 {offsets = [0, 1], sizes = [8, 1], strides = [1, 1]} : vector<8x2xf32> to vector<8x1xf32>
    %c0_9 = arith.constant 0 : index
    %c0_10 = arith.constant 0 : index
    %c0_11 = arith.constant 0 : index
    %29 = vector.load %arg6[%c0_9, %c0_10, %c0_11] : memref<1x2x128xf32, #tpu.memory_space<vmem>>, vector<1x1x128xf32>
    %30 = vector.shape_cast %29 : vector<1x1x128xf32> to vector<1x128xf32>
    %c0_12 = arith.constant 0 : index
    %c1 = arith.constant 1 : index
    %c0_13 = arith.constant 0 : index
    %31 = vector.load %arg6[%c0_12, %c1, %c0_13] : memref<1x2x128xf32, #tpu.memory_space<vmem>>, vector<1x1x128xf32>
    %32 = vector.shape_cast %31 : vector<1x1x128xf32> to vector<1x128xf32>
    %33 = vector.broadcast %27 : vector<8x1xf32> to vector<8x128xf32>
    %34 = vector.broadcast %30 : vector<1x128xf32> to vector<8x128xf32>
    %35 = arith.subf %33, %34 : vector<8x128xf32>
    %36 = vector.broadcast %28 : vector<8x1xf32> to vector<8x128xf32>
    %37 = vector.broadcast %32 : vector<1x128xf32> to vector<8x128xf32>
    %38 = arith.subf %36, %37 : vector<8x128xf32>
    %39 = arith.mulf %35, %35 : vector<8x128xf32>
    %40 = arith.mulf %38, %38 : vector<8x128xf32>
    %41 = arith.addf %39, %40 : vector<8x128xf32>
    %42 = math.sqrt %41 : vector<8x128xf32>
    %cst_14 = arith.constant 5.000000e-02 : f32
    %43 = vector.broadcast %cst_14 : f32 to vector<8x128xf32>
    %44 = arith.mulf %43, %42 : vector<8x128xf32>
    %cst_15 = arith.constant 1.000000e+00 : f32
    %45 = vector.broadcast %cst_15 : f32 to vector<8x128xf32>
    %46 = arith.mulf %45, %24 : vector<8x128xf32>
    %47 = arith.subf %44, %46 : vector<8x128xf32>
    %c0_16 = arith.constant 0 : index
    %c0_17 = arith.constant 0 : index
    %c0_18 = arith.constant 0 : index
    %48 = vector.load %arg7[%c0_16, %c0_17, %c0_18] : memref<1x8x128xf32, #tpu.memory_space<vmem>>, vector<1x8x128xf32>
    %49 = vector.shape_cast %48 : vector<1x8x128xf32> to vector<8x128xf32>
    %50 = vector.shape_cast %47 : vector<8x128xf32> to vector<1x8x128xf32>
    tpu.vector_store %arg7[%c0_16, %c0_17, %c0_18], %50 {strides = array<i32>} : memref<1x8x128xf32, #tpu.memory_space<vmem>>, vector<1x8x128xf32>,
    return
  }
  func.func @transform_0(%arg0: i32, %arg1: i32, %arg2: i32) -> (i32, i32, i32) {
    %c0_i32 = arith.constant 0 : i32
    %c0_i32_0 = arith.constant 0 : i32
    return %arg0, %arg1, %c0_i32 : i32, i32, i32
  }
  func.func @transform_1(%arg0: i32, %arg1: i32, %arg2: i32) -> (i32, i32, i32) {
    %c0_i32 = arith.constant 0 : i32
    %c0_i32_0 = arith.constant 0 : i32
    return %arg0, %arg1, %c0_i32 : i32, i32, i32
  }
  func.func @transform_2(%arg0: i32, %arg1: i32, %arg2: i32) -> (i32, i32, i32) {
    %c0_i32 = arith.constant 0 : i32
    %c0_i32_0 = arith.constant 0 : i32
    return %arg0, %c0_i32, %arg2 : i32, i32, i32
  }
  func.func @transform_3(%arg0: i32, %arg1: i32, %arg2: i32) -> (i32, i32, i32) {
    %c0_i32 = arith.constant 0 : i32
    %c0_i32_0 = arith.constant 0 : i32
    return %arg0, %c0_i32, %arg2 : i32, i32, i32
  }
  func.func @transform_4(%arg0: i32, %arg1: i32, %arg2: i32) -> (i32, i32, i32) {
    %c0_i32 = arith.constant 0 : i32
    return %arg0, %arg1, %arg2 : i32, i32, i32
  }
}

</mosaic_0001>

<bundles_post_ra>
// kernel: tpu_custom_call.1
= control target key start
LH: loop header
LB: loop body
LE: loop exit
PB: predicated region body
PF: predicated region fallthrough
CT: control target
= control target key end

     0   :  { %9 = vsyncpa [#allocation3], 0  ;;  %s825_s0 = inlined_call_operand.vmem [shape: f32[2,8,2], index: 0, kind: input, shape index: {}]   ;;  %s826_s1 = inlined_call_operand.vmem [shape: f32[2,8,2], index: 1, kind: input, shape index: {}]   ;;  %s827_s2 = inlined_call_operand.vmem [shape: s32[2,1,128], index: 2, kind: input, shape index: {}]   ;;  %s828_s3 = inlined_call_operand.vmem [shape: f32[2,2,128], index: 3, kind: input, shape index: {}]   ;;  %s829_s4 = inlined_call_operand.hbm [shape: f32[2,8,128], index: 4, kind: output, shape index: {}]  }
   0x1   :  { %11 = vsyncpa [#allocation3 + $0x1], 0  ;;  %s697_s15 = smov 0   ;;  %s699_s16 = smov 0  }
   0x2   :  { %s701_s17 = smov 0   ;;  %s703_s18 = smov 0  }
   0x3   :  { %s705_s19 = smov 0   ;;  %s707_s20 = smov 0  }
   0x4 LB: > { %s507_s21 = sadd.s32 4294967295, %s667_s20   ;;  %s508_s22 = sadd.s32 4294967294, %s667_s20   ;;  %s667_s20 = sphi %s707_s20, %s17_s20   ;;  %s663_s19 = sphi %s705_s19, %s836_s19   ;;  %s659_s18 = sphi %s703_s18, %s835_s18   ;;  %s655_s17 = sphi %s701_s17, %s834_s17   ;;  %s651_s16 = sphi %s699_s16, %s833_s16   ;;  %s647_s15 = sphi %s697_s15, %s832_s15  }
   0x5   : > { %s36_s23 = sadd.s32 1, %s663_s19  ;;  %s159_s24 = sadd.s32 1, %s655_s17 }
   0x6   : > { %p38_p0 = scmp.ge.s32.totalorder %s36_s23, 2  ;;  %p169_p1 = scmp.ne.s32.totalorder %s655_s17, %s651_s16 }
   0x7   : > { %p170_p2 = scmp.eq.s32.totalorder %s507_s21, 1  ;;  %p175_p3 = scmp.ne.s32.totalorder %s651_s16, %s647_s15 }
   0x8   : > { %s838_s23 = smov (%p38_p0, %s36_s23), 0  ;;  %p176_p5 = scmp.eq.s32.totalorder %s508_s22, 1 }
   0x9   : > { %p737_p4 = por %p170_p2, %p169_p1  ;;  %s152_s26 = ssub.s32 %s663_s19, %s838_s23 }
   0xa   : > { %p511_p6 = scmp.ge.s32.totalorder %s667_s20, 1  ;;  %p157_p7 = scmp.eq.s32.totalorder %s152_s26, 0 }
   0xb   : > { %p744_p8 = por %p176_p5, %p175_p3  ;;  %p233_p9 = scmp.lt.s32.totalorder %s667_s20, 3 }
   0xc   : > { %s750_s28 = scalar_select %p157_p7, %s655_s17, %s159_s24  }
   0xd   : > { %p234_p10 = pnand %p511_p6, %p233_p9 }
   0xe   : > { %p281_p11 = scmp.lt.s32.totalorder (!%p234_p10), %s659_s18, 1  ;;  %vm309_vm0 = vcmask (!%p234_p10), 15360   ;;  %v669_v2 = vmov (!%p234_p10), 0   ;;  %v670_v4 = vmov (!%p234_p10), 1   ;;  %v324_v22 = vlaneseq (!%p234_p10)  ;;  %s278_s26 = sand.u32 (!%p234_p10), 1, %s651_s16  }
   0xf   : > { %237 = sbr.rel (%p234_p10) target bundleno = 486 (0x1e6), region = 36  ;;  %579 = vset.pattern.permute.xlu1 (!%p234_p10), %v669_v2  ;;  %581 = vset.pattern.permute.xlu0 (!%p234_p10), %v670_v4 }
  0x10   : > { %v325_v24 = vshrl.u32 (!%p234_p10), %v324_v22, 7 }
  0x12   : > { %v326_v26 = vsub.s32 (!%p234_p10), 0, %v325_v24 }
  0x16   : > { %s754_s29 = scalar_select %p281_p11, %s659_s18, 1 }
  0x18   : > { %s513_s30 = sshll.u32 %s754_s29, 3  ;;  %s515_s11 = sshll.u32 %s754_s29, 1 }
  0x19   : > { %s287_s7 = scalar_lea.vmem %s825_s0, %s513_s30  ;;  %s294_s10 = scalar_lea.vmem %s826_s1, %s513_s30 }
  0x1a   : > { %v308_v0 = vld [vmem:[%s287_s7] sm:$0xff]  ;;  %s307_s14 = scalar_lea.vmem %s828_s3, %s515_s11  ;;  %s300_s24 = scalar_lea.vmem %s827_s2, %s754_s29 }
  0x1b   : > { %v310_v1 = vsel %vm309_vm0, %v308_v0, -inf  ;;  %v339_v3 = vld [vmem:[%s294_s10] sm:$0xff]  ;;  %s512_s30 = sshll.u32 %s278_s26, 3  ;;  %s519_s29 = sshll.u32 %s659_s18, 7 }
  0x1c   : > { %311 = vmax.xlane.f32.xlu0 %v310_v1  ;;  %344 = vperm.xlu1 %579, %v339_v3   ;;  %v516_v14 = vld [vmem:[%s307_s14] ss:$0 sm:$0xff]  ;;  %v517_v15 = vld [vmem:[%s307_s14 + $0x1] ss:$0 sm:$0xff]  ;;  %s280_s5 = scalar_lea.vmem [#allocation2], %s512_s30  ;;  %s778_s9 = scalar_lea.hbm %s829_s4, %s519_s29 }
  0x1d   : > { %v321_v23 = vld [vmem:[%s300_s24] sm:$0x1]  ;;  %s390_s6 = sshll.u32 %s280_s5, 4  ;;  %s375_s10 = scalar_lea.sflag [#allocation3], %s278_s26  ;;  %s780_s6 = int_to_ptr.vmem [resolvable:$true] %s390_s6 }
  0x1e   : > { %vm322_vm1 = vcmp.eq.s32.totalorder %v321_v23, 1  ;;  %s589_s18 = scalar_lea.vmem %s780_s6, 128  ;;  %s671_s11 = smov [#allocation2]  }
  0x1f   : > { %v323_v28 = vsel %vm322_vm1, 1, %v669_v2  ;;  %p590_p12 = scmp.ne.s32.totalorder %s780_s6, %s589_s18  ;;  %s593_s12 = sshll.u32 %s671_s11, 4  ;;  %s594_s12 = int_to_ptr.vmem [resolvable:$false] %s593_s12 }
  0x20   : > { %580 = vset.pattern.permute.xlu1 %v670_v4  ;;  %v327_v30 = vrot.slane %v323_v28, %v326_v26  ;;  %s595_s13 = scalar_lea.vmem %s594_s12, 256  ;;  %p596_p1 = scmp.lt.s32.totalorder %s780_s6, %s594_s12 }
  0x21   : > { %353 = vperm.xlu1 %580, %v339_v3   ;;  %p591_p13 = pnand %p590_p12, %p737_p4  ;;  %p597_p2 = scmp.lt.s32.totalorder %s595_s13, %s589_s18 }
  0x22   : > { %vm328_vm4 = vcmp.eq.s32.totalorder %v327_v30, 1 }
  0x23   : > { %p592_p0 = pneg %p591_p13  ;;  %p598_p3 = por %p597_p2, %p596_p1 }
  0x25   : > { %582 = vset.pattern.permute.xlu1 %v669_v2  ;;  %p599_p5 = pnand %p598_p3, %p592_p0 }
  0x9b   : > { %v345_v13 = vpop.permute.xlu1 %344 }
  0x9c   : > { %v351_v17 = vsub.f32 %v345_v13, %v516_v14 }
  0x9e   : > { %v361_v19 = vmul.f32 %v351_v17, %v351_v17 }
  0xa0   : > { %v354_v16 = vpop.permute.xlu1 %353 }
  0xa1   : > { %v360_v18 = vsub.f32 %v354_v16, %v517_v15 }
  0xa3   : > { %v362_v20 = vmul.f32 %v360_v18, %v360_v18 }
  0xa5   : > { %v363_v21 = vadd.f32 %v362_v20, %v361_v19 }
  0xa7   : > { %vm366_vm2 = vcmp.eq.f32.partialorder %v363_v21, inf  ;;  %v369_v29 = vand.u32 2147483648, %v363_v21  ;;  %vm368_vm3 = vcmp.eq.f32.partialorder %v363_v21, 0.0 }
  0xa9   : > { %v312_v5 = vpop.xlane.xlu0 %311 }
  0xaa   : > { %v313_v6 = vsub.f32 %v308_v0, %v312_v5 }
  0xac   : > { %v314_v7 = vmul.f32 1.442695, %v313_v6 }
  0xae   : > { %583 = vpow2.f32 %v314_v7 }
  0xb8   : > { %v584_v8 = vpop.eup %583 }
  0xb9   : > { %v316_v9 = vsel %vm309_vm0, %v584_v8, 0.0 }
  0xba   : > { %317 = vadd.xlane.f32.xlu0 %v316_v9 }
 0x147   : > { %v318_v10 = vpop.xlane.xlu0 %317 }
 0x148   : > { %585 = vrcp.f32 %v318_v10 }
 0x149   : > { %587 = vrsqrt.f32 %v363_v21 }
 0x152   : > { %v586_v11 = vpop.eup %585 }
 0x153   : > { %v320_v12 = vmul.f32 %v586_v11, %v584_v8  ;;  %v588_v25 = vpop.eup %587 }
 0x154   : > { %v365_v27 = vmul.f32 %v588_v25, %v363_v21 }
 0x155   : > { %335 = vperm.xlu1 %582, %v320_v12   ;;  %331 = vperm.xlu0 %581, %v320_v12  }
 0x156   : > { %v367_v31 = vsel %vm366_vm2, %v363_v21, %v365_v27 }
 0x157   : > { %v370_v32 = vsel %vm368_vm3, %v369_v29, %v367_v31 }
 0x158   : > { %v371_v34 = vmul.f32 0.05, %v370_v32 }
 0x1d4   : > { %v336_v33 = vpop.permute.xlu1 %335  ;;  %v332_v35 = vpop.permute.xlu0 %331 }
 0x1d5   : > { %v338_v36 = vsel %vm328_vm4, %v332_v35, %v336_v33 }
 0x1d6   : > { %v372_v37 = vsub.f32 %v371_v34, %v338_v36 }
 0x1d8   : > { %373 = vst [vmem:[%s280_s5] sm:$0xff] %v372_v37 }
 0x1d9   : > { %602 = shalt.err (!%p599_p5)
}
 0x1da   : > { %s603_s14 = scalar_lea.hbm %s778_s9, 128  ;;  %s607_s24 = scalar_lea.hbm %s829_s4, 256 }
 0x1db   : > { %p604_p6 = scmp.ne.s32.totalorder %s778_s9, %s603_s14  ;;  %p608_p10 = scmp.lt.u32.totalorder %s778_s9, %s829_s4 }
 0x1dc   : > { %p609_p11 = scmp.lt.u32.totalorder %s607_s24, %s603_s14  ;;  %p611_p13 = scmp.lt.u32.totalorder %s603_s14, %s778_s9 }
 0x1dd   : > { %p605_p7 = pnand %p604_p6, %p737_p4 }
 0x1de   : > { %p610_p12 = por %p609_p11, %p608_p10 }
 0x1df   : > { %p606_p9 = pneg %p605_p7 }
 0x1e0   : > { %p612_p0 = por %p611_p13, %p610_p12 }
 0x1e2   : > { %p613_p1 = pnand %p612_p0, %p606_p9 }
 0x1e4   : > { %616 = shalt.err (!%p613_p1)
}
 0x1e5   : > { %522 = dma.vmem_to_hbm [thread:$0]  (%p737_p4), %s780_s6, 128, %s778_s9, %s375_s10  }
 0x1e6 PF: > { %p528_p2 = scmp.ge.s32.totalorder %s667_s20, 2  ;;  %s402_s29 = sand.u32 1, %s647_s15  }
 0x1e7   : > { %s403_s5 = scalar_lea.sflag [#allocation3], %s402_s29 }
 0x1e8   : > { %p525_p3 = pnand %p528_p2, %p744_p8 }
 0x1ea   : > { %642 = dma.done.wait (!%p525_p3), %s403_s5, 128  }
 0x1eb   : > { %644 = vsyncadd (!%p525_p3), %s403_s5, 4294967168  ;;  %s17_s20 = sadd.s32 1, %s667_s20   ;;  %s832_s15 = smov %s651_s16 }
 0x1ec   : > { %p14_p5 = scmp.ge.s32.totalorder %s17_s20, 4   ;;  %s833_s16 = smov %s655_s17 }
 0x1ed   : > { %s834_s17 = smov %s750_s28  ;;  %s835_s18 = smov %s663_s19 }
 0x1ee   : > { %s836_s19 = smov %s838_s23  ;;  %16 = sbr.rel (!%p14_p5) target bundleno = 4 (0x4), region = 80 }
 0x1f5   :  { %408 = vsyncpa [#allocation3], 1 }
 0x1f6   :  { %410 = vsyncpa [#allocation3 + $0x1], 1 }

</bundles_post_ra>
